<compile_context>
chip_gen: v7x
topology: tpu7x:2x2x1
jax: 0.10.0
libtpu: 0.0.40
codegen_flags: <defaults>
</compile_context>

<pallas_src>
import functools

import jax
import jax.numpy as jnp
from jax.experimental import pallas as pl
from jax.experimental.pallas import tpu as pltpu


# ---------------------------------------------------------------------------
# Kernels
# ---------------------------------------------------------------------------

def _dma_copy_kernel(x_hbm, o_hbm, sem):
    """Whole-array HBM->HBM copy: one DMA descriptor, no VMEM round trip."""
    cp = pltpu.make_async_copy(x_hbm, o_hbm, sem)
    cp.start()
    cp.wait()


def _chunked_dma_copy_kernel(x_hbm, o_hbm, sem, *, rows_per_chunk):
    """One disjoint HBM->HBM DMA descriptor per grid step.

    With dimension_semantics=("parallel",) the grid steps are sharded across
    TensorCores on v7x, so both cores issue DMA traffic concurrently.
    """
    i = pl.program_id(0)
    start = pl.multiple_of(i * rows_per_chunk, rows_per_chunk)
    cp = pltpu.make_async_copy(
        x_hbm.at[pl.ds(start, rows_per_chunk)],
        o_hbm.at[pl.ds(start, rows_per_chunk)],
        sem,
    )
    cp.start()
    cp.wait()


# ---------------------------------------------------------------------------
# Wrapper
# ---------------------------------------------------------------------------

_CHUNK_THRESHOLD_BYTES = 4 * 1024 * 1024  # only shard the DMA for arrays >= 4 MiB
_MAX_CHUNKS = 8


def _num_chunks(rows):
    """Largest chunk count in {8, 4, 2} that divides `rows` evenly, else 1."""
    for c in (_MAX_CHUNKS, 4, 2):
        if rows % c == 0:
            return c
    return 1


@jax.jit
def identity(features):
    """Identity.forward(features): returns `features` unchanged (bit-exact).

    NOTE: the module semantics allow the true optimum `return features`
    (zero HBM traffic).  This wrapper materializes the pass-through as a
    Pallas kernel — the cheapest mandatory-copy form: a direct HBM->HBM DMA.
    """
    # Degenerate inputs: nothing to DMA (zero-sized blocks can't lower) and a
    # 0-d scalar is not worth a descriptor — pass-through semantics are exact.
    if features.size == 0 or features.ndim == 0:
        return features

    nbytes = features.size * features.dtype.itemsize
    cost = pl.CostEstimate(flops=0, transcendentals=0, bytes_accessed=2 * nbytes)

    # Large, lane-divisible arrays: split into a few DMA descriptors over a
    # "parallel" grid (v7x: both TensorCores participate; v5e/v6e: harmless).
    if nbytes >= _CHUNK_THRESHOLD_BYTES and features.size % 128 == 0:
        rows = features.size // 128
        nchunks = _num_chunks(rows)
        if nchunks > 1:
            x2d = features.reshape(rows, 128)  # contiguous reshape: layout plumbing only
            out2d = pl.pallas_call(
                functools.partial(
                    _chunked_dma_copy_kernel, rows_per_chunk=rows // nchunks
                ),
                out_shape=jax.ShapeDtypeStruct((rows, 128), features.dtype),
                grid=(nchunks,),
                in_specs=[pl.BlockSpec(memory_space=pl.ANY)],
                out_specs=pl.BlockSpec(memory_space=pl.ANY),
                scratch_shapes=[pltpu.SemaphoreType.DMA],
                compiler_params=pltpu.CompilerParams(
                    dimension_semantics=("parallel",),
                ),
                cost_estimate=cost,
            )(x2d)
            return out2d.reshape(features.shape)

    # Default path: one whole-array HBM->HBM DMA descriptor (no grid, no VMEM).
    return pl.pallas_call(
        _dma_copy_kernel,
        out_shape=jax.ShapeDtypeStruct(features.shape, features.dtype),
        in_specs=[pl.BlockSpec(memory_space=pl.ANY)],
        out_specs=pl.BlockSpec(memory_space=pl.ANY),
        scratch_shapes=[pltpu.SemaphoreType.DMA],
        cost_estimate=cost,
    )(features)


# ---------------------------------------------------------------------------
# Self-test
# ---------------------------------------------------------------------------

if __name__ == "__main__":
    key = jax.random.PRNGKey(0)
    k_small, k_big = jax.random.split(key)

    # Shapes consistent with the module's usage: [batch, seq, in_features].
    # Identity.__init__(in_features) ignores its argument, so no parameters.
    batch, seq, in_features = 2, 8, 32
    features = jax.random.normal(k_small, (batch, seq, in_features), dtype=jnp.float32)

    out = jax.block_until_ready(identity(features))
    assert out.shape == features.shape
    assert out.dtype == features.dtype
    assert jnp.array_equal(out, features)

    # Also exercise the sharded-DMA ("parallel" grid) path: 4 MiB f32 array
    # -> (8192, 128) lane-dense view -> 8 disjoint DMA descriptors.
    big = jax.random.normal(k_big, (1024, 1024), dtype=jnp.float32)
    out_big = jax.block_until_ready(identity(big))
    assert out_big.shape == big.shape
    assert out_big.dtype == big.dtype
    assert jnp.array_equal(out_big, big)

    print("KERNEL_OK")
</pallas_src>

<mosaic_0001>
module attributes {stable_mosaic.version = 11 : i64} {
  func.func @_dma_copy_kernel(%arg0: memref<2x8x32xf32, #tpu.memory_space<any>>, %arg1: memref<2x8x32xf32, #tpu.memory_space<any>>, %arg2: memref<!tpu.dma_semaphore, #tpu.memory_space<semaphore_mem>>) attributes {dimension_semantics = [], scalar_prefetch = 0 : i64, scratch_operands = 1 : i64, tpu.core_type = #tpu.core_type<tc>} {
    tpu.enqueue_dma source(%arg0 : memref<2x8x32xf32, #tpu.memory_space<any>>) target(%arg1 : memref<2x8x32xf32, #tpu.memory_space<any>>) target_semaphore(%arg2 : memref<!tpu.dma_semaphore, #tpu.memory_space<semaphore_mem>>)
    tpu.wait_dma2 semaphore(%arg2 : memref<!tpu.dma_semaphore, #tpu.memory_space<semaphore_mem>>) src(%arg0 : memref<2x8x32xf32, #tpu.memory_space<any>>) dst(%arg1 : memref<2x8x32xf32, #tpu.memory_space<any>>)
    return
  }
}

</mosaic_0001>

<bundles_post_ra>
// kernel: identity.1
= control target key start
LH: loop header
LB: loop body
LE: loop exit
PB: predicated region body
PF: predicated region fallthrough
CT: control target
= control target key end

     0   :  { %s35_s6 = smov [#allocation2]   ;;  %s36_s7 = smov [#allocation3]   ;;  %s54_s0 = inlined_call_operand.hbm [shape: f32[2,8,32], index: 0, kind: input, shape index: {}]   ;;  %s55_s1 = inlined_call_operand.hbm [shape: f32[2,8,32], index: 1, kind: output, shape index: {}]  }
   0x1   :  { %s37_s8 = smov 0  }
   0x2   :  { %18 = dma.general %s54_s0, 256, %s55_s1, %s35_s6, %s36_s7, [#allocation4], %s37_s8, 0  }
   0x3   :  { %33 = dma.done.wait [#allocation2], 256 }
   0x4   :  { %34 = vsyncadd [#allocation2], 4294967040 }
   0x5   :  { %23 = vsyncmov [#allocation2] }
   0x8   :  { %s24_s13 = vpop.sfrf %23 }
   0x9   :  { %p29_p0 = scmp.ne.s32.totalorder %s24_s13, 0 }
   0xb   :  { %28 = shalt.err (%p29_p0)  }

</bundles_post_ra>
